<compile_context>
chip_gen: v6e
topology: v6e:2x2x1
jax: 0.10.0
libtpu: 0.0.40
codegen_flags: <defaults>
</compile_context>

<pallas_src>
import functools

import jax
import jax.numpy as jnp
from jax.experimental import pallas as pl
from jax.experimental.pallas import tpu as pltpu


_INV_SQRT2 = 0.7071067811865476
_DEFAULT_VMEM_LIMIT = 56 * 1024 * 1024   # safe on v7x (64 MiB/TC); raise on v5e/v6e if desired
_VMEM_MARGIN = 8 * 1024 * 1024           # headroom for compiler-internal scratch


def _gelu(h, approximate):
    if approximate:
        # tanh-approx GELU -> EUP slot, overlaps with MXU work.
        return jax.nn.gelu(h, approximate=True)
    # Exact erf GELU: bit-parity with PyTorch nn.GELU() default (VPU polynomial).
    return 0.5 * h * (1.0 + jax.lax.erf(h * jnp.float32(_INV_SQRT2)))


# ---------------- kernels ----------------

def mlp_kernel_resident(x_ref, w1_ref, b1_ref, w2_ref, b2_ref, o_ref, *,
                        approximate_gelu):
    """Weights fully VMEM-resident; one row tile per grid step, no accumulator."""
    h = jnp.dot(x_ref[...], w1_ref[...], preferred_element_type=jnp.float32)
    h = _gelu(h + b1_ref[...].astype(jnp.float32), approximate_gelu)
    out = jnp.dot(h.astype(w2_ref.dtype), w2_ref[...],
                  preferred_element_type=jnp.float32)
    o_ref[...] = (out + b2_ref[...].astype(jnp.float32)).astype(o_ref.dtype)


def mlp_kernel_ktiled(x_ref, w1_ref, b1_ref, w2_ref, b2_ref, o_ref, acc_ref, *,
                      approximate_gelu):
    """Hidden-dim streamed in tiles; f32 accumulation with fused finalize."""
    k = pl.program_id(1)
    is_last = k == pl.num_programs(1) - 1

    @pl.when(k == 0)
    def _init():
        acc_ref[...] = jnp.zeros_like(acc_ref)

    h = jnp.dot(x_ref[...], w1_ref[...], preferred_element_type=jnp.float32)
    h = _gelu(h + b1_ref[...].astype(jnp.float32), approximate_gelu)
    contrib = jnp.dot(h.astype(w2_ref.dtype), w2_ref[...],
                      preferred_element_type=jnp.float32)

    @pl.when(jnp.logical_not(is_last))
    def _accum():
        acc_ref[...] += contrib

    @pl.when(is_last)
    def _finalize():
        # Fuse last partial product + b2 + cast directly into the output tile.
        o_ref[...] = (acc_ref[...] + contrib
                      + b2_ref[...].astype(jnp.float32)).astype(o_ref.dtype)


# ---------------- helpers ----------------

def _round_up(v, m):
    return ((v + m - 1) // m) * m


def _pad2(a, rows, cols):
    pr, pc = rows - a.shape[0], cols - a.shape[1]
    if pr or pc:
        a = jnp.pad(a, ((0, pr), (0, pc)))
    return a


def pad_mlp_params(w1, b1, w2, b2, lane=128):
    """Pad Linear params to lane-aligned shapes ONCE at model init.

    Hoists the HBM->HBM pad copy out of the per-forward-call jit path.
    Returns (w1p, b1p, w2p, b2p, out_features).
    """
    c_in, hidden = w1.shape
    c_out = w2.shape[1]
    c_in_p, hid_p, c_out_p = (_round_up(c_in, lane), _round_up(hidden, lane),
                              _round_up(c_out, lane))
    return (_pad2(w1, c_in_p, hid_p),
            _pad2(b1.reshape(1, -1), 1, hid_p),
            _pad2(w2, hid_p, c_out_p),
            _pad2(b2.reshape(1, -1), 1, c_out_p),
            c_out)


# ---------------- wrapper ----------------

@functools.partial(
    jax.jit,
    static_argnames=("out_features", "block_rows", "block_hidden",
                     "approximate_gelu", "min_row_tiles", "vmem_limit_bytes",
                     "force_hidden_tiling"))
def mlp_pallas(x, w1, b1, w2, b2, *, out_features=None, block_rows=512,
               block_hidden=512, approximate_gelu=True, min_row_tiles=2,
               vmem_limit_bytes=None, force_hidden_tiling=False):
    """x: (N, in_f); w1: (in_f, hidden); b1: (hidden,); w2: (hidden, out_f); b2: (out_f,).

    Params may be pre-padded via pad_mlp_params (then pass out_features explicitly).
    """
    n, c_in = x.shape
    b1 = b1.reshape(1, -1)
    b2 = b2.reshape(1, -1)
    c_out = int(out_features) if out_features is not None else int(w2.shape[1])

    # Lane-dense feature dims (multiples of 128) -> un-masked stores / full vregs.
    c_in_p = _round_up(max(c_in, w1.shape[0]), 128)
    hid_p = _round_up(max(w1.shape[1], w2.shape[0]), 128)
    c_out_p = _round_up(max(c_out, w2.shape[1]), 128)

    # ---- Row tiling: minimize row padding; >=2 tiles where possible (v7x megacore). ----
    n8 = _round_up(n, 8)
    num_row_tiles = max(pl.cdiv(n8, _round_up(block_rows, 8)), 1)
    if n8 >= 16:
        num_row_tiles = max(num_row_tiles, min_row_tiles)
    tm = _round_up(pl.cdiv(n8, num_row_tiles), 8)
    num_row_tiles = pl.cdiv(n8, tm)
    n_p = tm * num_row_tiles

    # ---- VMEM budget / resident-weight decision. ----
    w_item = jnp.dtype(w1.dtype).itemsize
    x_item = jnp.dtype(x.dtype).itemsize
    # Count weights x2 (pipeline buffers) even though they are only fetched once.
    weight_vmem = 2 * (c_in_p * hid_p + hid_p * c_out_p + hid_p + c_out_p) * w_item
    io_vmem = 2 * tm * (c_in_p + c_out_p) * x_item          # double-buffered x / out tiles
    h_vmem = tm * hid_p * 4                                  # f32 hidden activations
    limit = int(vmem_limit_bytes) if vmem_limit_bytes is not None else _DEFAULT_VMEM_LIMIT
    budget = limit - _VMEM_MARGIN
    resident = (not force_hidden_tiling) and (weight_vmem + io_vmem + h_vmem <= budget)

    if resident:
        # -------- Fast path: weights fetched from HBM exactly once, 1-D grid. --------
        xp = _pad2(x, n_p, c_in_p)
        w1p = _pad2(w1, c_in_p, hid_p)
        b1p = _pad2(b1, 1, hid_p)
        w2p = _pad2(w2, hid_p, c_out_p)
        b2p = _pad2(b2, 1, c_out_p)

        kernel = functools.partial(mlp_kernel_resident,
                                   approximate_gelu=approximate_gelu)
        grid_spec = pltpu.PrefetchScalarGridSpec(
            num_scalar_prefetch=0,
            grid=(num_row_tiles,),
            in_specs=[
                pl.BlockSpec((tm, c_in_p), lambda i: (i, 0)),      # x row tile
                pl.BlockSpec((c_in_p, hid_p), lambda i: (0, 0)),   # W1 (resident)
                pl.BlockSpec((1, hid_p), lambda i: (0, 0)),        # b1 (resident)
                pl.BlockSpec((hid_p, c_out_p), lambda i: (0, 0)),  # W2 (resident)
                pl.BlockSpec((1, c_out_p), lambda i: (0, 0)),      # b2 (resident)
            ],
            out_specs=pl.BlockSpec((tm, c_out_p), lambda i: (i, 0)),
        )
        dim_sems = ("parallel",)
        weight_stream_bytes = (w1p.size + b1p.size + w2p.size + b2p.size) * w_item
    else:
        # -------- Streaming fallback: hidden axis tiled ("arbitrary", innermost). --------
        tk = min(_round_up(block_hidden, 128), hid_p)
        hid_p = _round_up(hid_p, tk)
        xp = _pad2(x, n_p, c_in_p)
        w1p = _pad2(w1, c_in_p, hid_p)
        b1p = _pad2(b1, 1, hid_p)
        w2p = _pad2(w2, hid_p, c_out_p)
        b2p = _pad2(b2, 1, c_out_p)

        kernel = functools.partial(mlp_kernel_ktiled,
                                   approximate_gelu=approximate_gelu)
        grid_spec = pltpu.PrefetchScalarGridSpec(
            num_scalar_prefetch=0,
            grid=(num_row_tiles, hid_p // tk),
            in_specs=[
                pl.BlockSpec((tm, c_in_p), lambda i, k: (i, 0)),     # x row tile
                pl.BlockSpec((c_in_p, tk), lambda i, k: (0, k)),     # W1 hidden tile
                pl.BlockSpec((1, tk), lambda i, k: (0, k)),          # b1 hidden tile
                pl.BlockSpec((tk, c_out_p), lambda i, k: (k, 0)),    # W2 hidden tile
                pl.BlockSpec((1, c_out_p), lambda i, k: (0, 0)),     # b2 (constant)
            ],
            out_specs=pl.BlockSpec((tm, c_out_p), lambda i, k: (i, 0)),
            scratch_shapes=[pltpu.VMEM((tm, c_out_p), jnp.float32)],
        )
        dim_sems = ("parallel", "arbitrary")
        # Weights are re-streamed once per row tile in this path.
        weight_stream_bytes = ((w1p.size + b1p.size + w2p.size + b2p.size)
                               * w_item * num_row_tiles)

    flops = 2 * n_p * (c_in_p * hid_p + hid_p * c_out_p)
    bytes_accessed = (xp.size * x_item + weight_stream_bytes
                      + n_p * c_out_p * x_item)

    out_p = pl.pallas_call(
        kernel,
        out_shape=jax.ShapeDtypeStruct((n_p, c_out_p), x.dtype),
        grid_spec=grid_spec,
        compiler_params=pltpu.CompilerParams(
            dimension_semantics=dim_sems,
            vmem_limit_bytes=limit),
        cost_estimate=pl.CostEstimate(
            flops=flops,
            transcendentals=n_p * hid_p,
            bytes_accessed=bytes_accessed),
    )(xp, w1p, b1p, w2p, b2p)

    if n_p != n or c_out_p != c_out:
        out_p = out_p[:n, :c_out]
    return out_p


# ---------------- reference & test ----------------

def reference_mlp(x, w1, b1, w2, b2, approximate_gelu=True):
    h = (x.astype(jnp.float32) @ w1.astype(jnp.float32)
         + b1.astype(jnp.float32).reshape(1, -1))
    if approximate_gelu:
        h = jax.nn.gelu(h, approximate=True)
    else:
        h = 0.5 * h * (1.0 + jax.lax.erf(h * jnp.float32(_INV_SQRT2)))
    out = h @ w2.astype(jnp.float32) + b2.astype(jnp.float32).reshape(1, -1)
    return out.astype(x.dtype)


def _make_params(key, n_tokens, in_f, hidden_f, out_f, dtype=jnp.float32):
    kx, k1, kb1, k2, kb2 = jax.random.split(key, 5)
    x = jax.random.normal(kx, (n_tokens, in_f), jnp.float32).astype(dtype)
    w1 = (jax.random.normal(k1, (in_f, hidden_f), jnp.float32) * 0.05).astype(dtype)
    b1 = (jax.random.normal(kb1, (hidden_f,), jnp.float32) * 0.05).astype(dtype)
    w2 = (jax.random.normal(k2, (hidden_f, out_f), jnp.float32) * 0.05).astype(dtype)
    b2 = (jax.random.normal(kb2, (out_f,), jnp.float32) * 0.05).astype(dtype)
    return x, w1, b1, w2, b2


if __name__ == "__main__":
    key = jax.random.PRNGKey(0)
    k_a, k_b, k_c = jax.random.split(key, 3)

    # Test 1: resident-weight fast path, weights pre-padded once (model-init style).
    # tokens = batch(2) * seq(8) = 16, in=32, hidden=4*32=128, out=32.
    x, w1, b1, w2, b2 = _make_params(k_a, 16, 32, 128, 32)
    w1p, b1p, w2p, b2p, c_out = pad_mlp_params(w1, b1, w2, b2)
    out = jax.block_until_ready(mlp_pallas(x, w1p, b1p, w2p, b2p, out_features=c_out))
    ref = reference_mlp(x, w1, b1, w2, b2, approximate_gelu=True)
    assert out.shape == ref.shape
    assert jnp.allclose(out, ref, atol=1e-4, rtol=1e-4), "mismatch (resident path)"

    # Test 2: exact erf GELU (torch nn.GELU parity), unaligned shapes, forced
    # hidden-tiled streaming path (exercises the accumulator / fused finalize).
    x2, w12, b12, w22, b22 = _make_params(k_b, 13, 96, 160, 80)
    out2 = jax.block_until_ready(mlp_pallas(
        x2, w12, b12, w22, b22, approximate_gelu=False,
        block_hidden=128, force_hidden_tiling=True))
    ref2 = reference_mlp(x2, w12, b12, w22, b22, approximate_gelu=False)
    assert out2.shape == ref2.shape
    assert jnp.allclose(out2, ref2, atol=1e-4, rtol=1e-4), "mismatch (k-tiled path)"

    # Test 3: bf16 activations/weights (f32 accumulation inside the kernel).
    x3, w13, b13, w23, b23 = _make_params(k_c, 24, 64, 256, 64, dtype=jnp.bfloat16)
    out3 = jax.block_until_ready(mlp_pallas(x3, w13, b13, w23, b23))
    ref3 = reference_mlp(x3, w13, b13, w23, b23, approximate_gelu=True)
    assert out3.shape == ref3.shape
    assert jnp.allclose(out3.astype(jnp.float32), ref3.astype(jnp.float32),
                        atol=5e-2, rtol=5e-2), "mismatch (bf16 path)"

    # TODO(synk): Dropout has p=0.0 in the module config -> identity; no RNG mask implemented.
    print("KERNEL_OK")
</pallas_src>

<mosaic_0001>
module attributes {stable_mosaic.version = 11 : i64} {
  func.func @mlp_kernel_resident(%arg0: i32, %arg1: memref<8x128xf32, #tpu.memory_space<vmem>>, %arg2: memref<128x128xf32, #tpu.memory_space<vmem>>, %arg3: memref<1x128xf32, #tpu.memory_space<vmem>>, %arg4: memref<128x128xf32, #tpu.memory_space<vmem>>, %arg5: memref<1x128xf32, #tpu.memory_space<vmem>>, %arg6: memref<8x128xf32, #tpu.memory_space<vmem>>) attributes {dimension_semantics = [#tpu.dimension_semantics<parallel>], iteration_bounds = array<i64: 2>, scalar_prefetch = 0 : i64, scratch_operands = 0 : i64, tpu.core_type = #tpu.core_type<tc>, window_params = [{transform_indices = @transform_0, window_bounds = array<i64: 8, 128>}, {pipeline_mode = #tpu.pipeline_mode<synchronous>, transform_indices = @transform_1, window_bounds = array<i64: 128, 128>}, {pipeline_mode = #tpu.pipeline_mode<synchronous>, transform_indices = @transform_2, window_bounds = array<i64: 1, 128>}, {pipeline_mode = #tpu.pipeline_mode<synchronous>, transform_indices = @transform_3, window_bounds = array<i64: 128, 128>}, {pipeline_mode = #tpu.pipeline_mode<synchronous>, transform_indices = @transform_4, window_bounds = array<i64: 1, 128>}, {transform_indices = @transform_5, window_bounds = array<i64: 8, 128>}]} {
    %c0 = arith.constant 0 : index
    %c0_0 = arith.constant 0 : index
    %0 = vector.load %arg1[%c0, %c0_0] : memref<8x128xf32, #tpu.memory_space<vmem>>, vector<8x128xf32>
    %c0_1 = arith.constant 0 : index
    %c0_2 = arith.constant 0 : index
    %1 = vector.load %arg2[%c0_1, %c0_2] : memref<128x128xf32, #tpu.memory_space<vmem>>, vector<128x128xf32>
    %cst = arith.constant dense<0.000000e+00> : vector<8x128xf32>
    %2 = tpu.matmul %0, %1, %cst {dimension_numbers = #tpu.dot_dimension_numbers<[1], [0], [0], [1], [0, 0, 1, 1], [], []>} : vector<8x128xf32>, vector<128x128xf32>, vector<8x128xf32> -> vector<8x128xf32>
    %c0_3 = arith.constant 0 : index
    %c0_4 = arith.constant 0 : index
    %3 = vector.load %arg3[%c0_3, %c0_4] : memref<1x128xf32, #tpu.memory_space<vmem>>, vector<1x128xf32>
    %4 = vector.broadcast %3 : vector<1x128xf32> to vector<8x128xf32>
    %5 = arith.addf %2, %4 : vector<8x128xf32>
    %6 = arith.mulf %5, %5 : vector<8x128xf32>
    %7 = arith.mulf %5, %6 : vector<8x128xf32>
    %cst_5 = arith.constant 4.471500e-02 : f32
    %8 = vector.broadcast %cst_5 : f32 to vector<8x128xf32>
    %9 = arith.mulf %8, %7 : vector<8x128xf32>
    %10 = arith.addf %5, %9 : vector<8x128xf32>
    %cst_6 = arith.constant 0.797884583 : f32
    %11 = vector.broadcast %cst_6 : f32 to vector<8x128xf32>
    %12 = arith.mulf %11, %10 : vector<8x128xf32>
    %13 = math.tanh %12 : vector<8x128xf32>
    %cst_7 = arith.constant 1.000000e+00 : f32
    %14 = vector.broadcast %cst_7 : f32 to vector<8x128xf32>
    %15 = arith.addf %14, %13 : vector<8x128xf32>
    %cst_8 = arith.constant 5.000000e-01 : f32
    %16 = vector.broadcast %cst_8 : f32 to vector<8x128xf32>
    %17 = arith.mulf %16, %15 : vector<8x128xf32>
    %18 = arith.mulf %5, %17 : vector<8x128xf32>
    %c0_9 = arith.constant 0 : index
    %c0_10 = arith.constant 0 : index
    %19 = vector.load %arg4[%c0_9, %c0_10] : memref<128x128xf32, #tpu.memory_space<vmem>>, vector<128x128xf32>
    %cst_11 = arith.constant dense<0.000000e+00> : vector<8x128xf32>
    %20 = tpu.matmul %18, %19, %cst_11 {dimension_numbers = #tpu.dot_dimension_numbers<[1], [0], [0], [1], [0, 0, 1, 1], [], []>} : vector<8x128xf32>, vector<128x128xf32>, vector<8x128xf32> -> vector<8x128xf32>
    %c0_12 = arith.constant 0 : index
    %c0_13 = arith.constant 0 : index
    %21 = vector.load %arg5[%c0_12, %c0_13] : memref<1x128xf32, #tpu.memory_space<vmem>>, vector<1x128xf32>
    %22 = vector.broadcast %21 : vector<1x128xf32> to vector<8x128xf32>
    %23 = arith.addf %20, %22 : vector<8x128xf32>
    %c0_14 = arith.constant 0 : index
    %c0_15 = arith.constant 0 : index
    %24 = vector.load %arg6[%c0_14, %c0_15] : memref<8x128xf32, #tpu.memory_space<vmem>>, vector<8x128xf32>
    tpu.vector_store %arg6[%c0_14, %c0_15], %23 {strides = array<i32>} : memref<8x128xf32, #tpu.memory_space<vmem>>, vector<8x128xf32>,
    return
  }
  func.func @transform_0(%arg0: i32) -> (i32, i32) {
    %c0_i32 = arith.constant 0 : i32
    %c0_i32_0 = arith.constant 0 : i32
    return %arg0, %c0_i32 : i32, i32
  }
  func.func @transform_1(%arg0: i32) -> (i32, i32) {
    %c0_i32 = arith.constant 0 : i32
    %c0_i32_0 = arith.constant 0 : i32
    %c0_i32_1 = arith.constant 0 : i32
    return %c0_i32, %c0_i32_0 : i32, i32
  }
  func.func @transform_2(%arg0: i32) -> (i32, i32) {
    %c0_i32 = arith.constant 0 : i32
    %c0_i32_0 = arith.constant 0 : i32
    %c0_i32_1 = arith.constant 0 : i32
    return %c0_i32, %c0_i32_0 : i32, i32
  }
  func.func @transform_3(%arg0: i32) -> (i32, i32) {
    %c0_i32 = arith.constant 0 : i32
    %c0_i32_0 = arith.constant 0 : i32
    %c0_i32_1 = arith.constant 0 : i32
    return %c0_i32, %c0_i32_0 : i32, i32
  }
  func.func @transform_4(%arg0: i32) -> (i32, i32) {
    %c0_i32 = arith.constant 0 : i32
    %c0_i32_0 = arith.constant 0 : i32
    %c0_i32_1 = arith.constant 0 : i32
    return %c0_i32, %c0_i32_0 : i32, i32
  }
  func.func @transform_5(%arg0: i32) -> (i32, i32) {
    %c0_i32 = arith.constant 0 : i32
    %c0_i32_0 = arith.constant 0 : i32
    return %arg0, %c0_i32 : i32, i32
  }
}

</mosaic_0001>

<bundles_post_ra>
// kernel: mlp_pallas.1
= control target key start
LH: loop header
LB: loop body
LE: loop exit
PB: predicated region body
PF: predicated region fallthrough
CT: control target
= control target key end

     0   :  { %10 = vsyncpa [#allocation3], 0  ;;  %s1061_s0 = inlined_call_operand.vmem [shape: f32[16,128], index: 0, kind: input, shape index: {}]   ;;  %s1062_s1 = inlined_call_operand.hbm [shape: f32[128,128], index: 1, kind: input, shape index: {}]   ;;  %s1063_s2 = inlined_call_operand.vmem [shape: f32[1,128], index: 2, kind: input, shape index: {}]   ;;  %s1064_s3 = inlined_call_operand.hbm [shape: f32[128,128], index: 3, kind: input, shape index: {}]   ;;  %s1065_s4 = inlined_call_operand.vmem [shape: f32[1,128], index: 4, kind: input, shape index: {}]   ;;  %s1066_s5 = inlined_call_operand.hbm [shape: f32[16,128], index: 5, kind: output, shape index: {}]  }
   0x1   :  { %11 = vsyncpa [#allocation6], 0 }
   0x2   :  { %12 = vsyncpa [#allocation4], 0 }
   0x3   :  { %14 = vsyncpa [#allocation4 + $0x1], 0  ;;  %s887_s18 = smov 0   ;;  %s889_s19 = smov 0  }
   0x4   :  { %s891_s20 = smov 0   ;;  %s893_s21 = smov 0  }
   0x5 LB: > { %s908_s22 = sadd.s32 4294967295, %s848_s21   ;;  %s542_s23 = sadd.s32 4294967294, %s848_s21   ;;  %s848_s21 = sphi %s893_s21, %s1080_s21   ;;  %s844_s20 = sphi %s891_s20, %s1079_s20   ;;  %s840_s19 = sphi %s889_s19, %s1078_s19   ;;  %s836_s18 = sphi %s887_s18, %s1077_s18  }
   0x6   : > { %s912_s24 = sadd.s32 1, %s848_s21   ;;  %s137_s25 = sadd.s32 1, %s844_s20 }
   0x7   : > { %s134_s26 = ssub.s32 %s848_s21, %s912_s24  ;;  %p147_p0 = scmp.ne.s32.totalorder %s844_s20, %s840_s19 }
   0x8   : > { %p135_p1 = scmp.eq.s32.totalorder %s134_s26, 0  ;;  %p148_p2 = scmp.eq.s32.totalorder %s908_s22, 1 }
   0x9   : > { %p153_p3 = scmp.ne.s32.totalorder %s840_s19, %s836_s18  ;;  %p154_p4 = scmp.eq.s32.totalorder %s542_s23, 1 }
   0xa   : > { %s923_s27 = scalar_select %p135_p1, %s844_s20, %s137_s25  }
   0xb   : > { %p925_p5 = por %p148_p2, %p147_p0  ;;  %p929_p6 = por %p154_p4, %p153_p3 }
   0xc   : > { %p543_p7 = scmp.ge.s32.totalorder %s848_s21, 1  ;;  %p161_p8 = scmp.lt.s32.totalorder %s848_s21, 3 }
   0xd   : > { %s1069_s29 = scalar_select %p929_p6, 1, 0 }
   0xe   : > { %p1067_p9 = scmp.eq.s32.totalorder %s908_s22, 0  ;;  %p936_p10 = pnand %p543_p7, %p161_p8 }
   0xf   : > { %s850_s6 = smov [#allocation2]   ;;  %s851_s9 = smov [#allocation5]  }
  0x10   : > { %s173_s7 = sshll.u32 %s850_s6, 4  ;;  %p672_p11 = pneg %p936_p10  ;;  %s174_s7 = int_to_ptr.vmem [resolvable:$true] %s173_s7 }
  0x11   : > { %s189_s10 = sshll.u32 %s851_s9, 4  ;;  %s739_s11 = scalar_lea.vmem %s174_s7, 2048  ;;  %s190_s10 = int_to_ptr.vmem [resolvable:$true] %s189_s10 }
  0x12   : > { %p944_p12 = pnand %p1067_p9, %p672_p11  ;;  %p740_p0 = scmp.ne.s32.totalorder %s174_s7, %s739_s11 }
  0x13   : > { %p747_p3 = scmp.lt.s32.totalorder %s174_s7, %s174_s7  ;;  %p748_p4 = scmp.lt.s32.totalorder %s739_s11, %s739_s11 }
  0x14   : > { %p730_p13 = pneg %p944_p12 }
  0x15   : > { %p749_p7 = por %p748_p4, %p747_p3 }
  0x16   : > { %p742_p1 = pnand %p740_p0, %p730_p13 }
  0x18   : > { %p743_p2 = pneg %p742_p1 }
  0x1a   : > { %p750_p8 = pnand %p749_p7, %p743_p2 }
  0x1c   : > { %753 = shalt.err (!%p750_p8)
}
  0x1d   : > { %s852_s12 = smov 128   ;;  %s853_s13 = smov 8  }
  0x1e   : > { %675 = dma.hbm_to_vmem [thread:$0]  (!%p944_p12), %s1062_s1, 2048, %s174_s7, [#allocation3], %s852_s12, %s852_s12, %s853_s13  }
  0x1f   : > { %s765_s16 = scalar_lea.vmem %s190_s10, 2048  ;;  %p773_p9 = scmp.lt.s32.totalorder %s190_s10, %s190_s10 }
  0x20   : > { %p766_p11 = scmp.ne.s32.totalorder %s190_s10, %s765_s16  ;;  %p774_p6 = scmp.lt.s32.totalorder %s765_s16, %s765_s16 }
  0x22   : > { %p768_p0 = pnand %p766_p11, %p730_p13  ;;  %p775_p3 = por %p774_p6, %p773_p9 }
  0x24   : > { %p769_p1 = pneg %p768_p0 }
  0x26   : > { %p776_p2 = pnand %p775_p3, %p769_p1 }
  0x28   : > { %779 = shalt.err (!%p776_p2)
}
  0x29   : > { %678 = dma.hbm_to_vmem [thread:$0]  (!%p944_p12), %s1064_s3, 2048, %s190_s10, [#allocation6], %s852_s12, %s852_s12, %s853_s13  }
  0x2a   : > { %215 = sbr.rel (%p936_p10) target bundleno = 518 (0x206), region = 40  ;;  %p1072_p4 = scmp.eq.s32.totalorder (!%p936_p10), %s908_s22, 0 }
  0x2f   : > { %823 = dma.done.wait (%p1072_p4), [#allocation3], 2048   ;;  %p1073_p13 = pmov %p1072_p4 }
  0x30   : > { %p1074_p7 = pmov %p1072_p4 }
  0x31   : > { %825 = vsyncadd (%p1073_p13), [#allocation3], 4294965248 }
  0x32   : > { %827 = dma.done.wait (%p1074_p7), [#allocation6], 2048   ;;  %p1075_p6 = pmov %p1072_p4 }
  0x33   : > { %v854_v0 = vmov 0.0   ;;  %vm855_vm0 = vmmov 0   ;;  %v266_v1 = vld [vmem:[#allocation2 + $0x78] sm:$0xff]  ;;  %v265_v2 = vld [vmem:[#allocation2 + $0x70] sm:$0xff]  ;;  %v264_v3 = vld [vmem:[#allocation2 + $0x68] sm:$0xff]  ;;  %p246_p9 = scmp.lt.s32.totalorder %s908_s22, 1 }
  0x34   : > { %829 = vsyncadd (%p1075_p6), [#allocation6], 4294965248  ;;  %592 = vmatprep.subr.mxu0 %v854_v0  ;;  %624 = vmatprep.mubr.msk.f32.mxu0 %vm855_vm0, %v854_v0  ;;  %v263_v4 = vld [vmem:[#allocation2 + $0x60] sm:$0xff]  ;;  %v262_v5 = vld [vmem:[#allocation2 + $0x58] sm:$0xff]  ;;  %s243_s10 = sand.u32 1, %s840_s19   ;;  %s555_s14 = sshll.u32 %s908_s22, 7 }
  0x35   : > { %627 = vmatprep.subr.mxu1 %v854_v0  ;;  %659 = vmatprep.mubr.msk.f32.mxu1 %vm855_vm0, %v854_v0  ;;  %v261_v6 = vld [vmem:[#allocation2 + $0x50] sm:$0xff]  ;;  %v260_v7 = vld [vmem:[#allocation2 + $0x48] sm:$0xff]  ;;  %v259_v8 = vld [vmem:[#allocation2 + $0x40] sm:$0xff]  ;;  %s247_s25 = scalar_select %p246_p9, %s908_s22, 1 }
  0x36   : > { %593 = vmatpush3.msra.mxu0 %v266_v1  ;;  %v258_v9 = vld [vmem:[#allocation2 + $0x38] sm:$0xff]  ;;  %v257_v10 = vld [vmem:[#allocation2 + $0x30] sm:$0xff]  ;;  %v256_v11 = vld [vmem:[#allocation2 + $0x28] sm:$0xff]  ;;  %s550_s11 = sshll.u32 %s243_s10, 3  ;;  %s856_s6 = smov [#allocation7]  }
  0x37   : > { %594 = vmatprep.subr.mxu0 %v854_v0  ;;  %v255_v12 = vld [vmem:[#allocation2 + $0x20] sm:$0xff]  ;;  %v254_v13 = vld [vmem:[#allocation2 + $0x18] sm:$0xff]  ;;  %s551_s26 = sshll.u32 %s247_s25, 3  ;;  %v253_v14 = vld [vmem:[#allocation2 + $0x10] sm:$0xff]  ;;  %s245_s15 = scalar_lea.vmem [#allocation7], %s550_s11 }
  0x38   : > { %595 = vmatpush3.msra.mxu0 %v265_v2  ;;  %v252_v15 = vld [vmem:[#allocation2 + $0x8] sm:$0xff]  ;;  %s249_s7 = scalar_lea.vmem %s1061_s0, %s551_s26  ;;  %v251_v16 = vld [vmem:[#allocation2] sm:$0xff]  ;;  %v368_v18 = vld [vmem:[#allocation5 + $0x78] sm:$0xff]  ;;  %s461_s16 = sshll.u32 %s245_s15, 4  ;;  %s462_s16 = int_to_ptr.vmem [resolvable:$true] %s461_s16 }
  0x39   : > { %596 = vmatprep.subr.mxu0 %v854_v0  ;;  %v250_v17 = vld [vmem:[%s249_s7] sm:$0xff]  ;;  %628 = vmatpush3.msra.mxu1 %v368_v18  ;;  %v367_v19 = vld [vmem:[#allocation5 + $0x70] sm:$0xff]  ;;  %v366_v20 = vld [vmem:[#allocation5 + $0x68] sm:$0xff]  ;;  %s1026_s25 = scalar_lea.hbm %s1066_s5, %s555_s14  ;;  %s448_s26 = scalar_lea.sflag [#allocation4], %s243_s10 }
  0x3a   : > { %597 = vmatpush3.msra.mxu0 %v264_v3  ;;  %629 = vmatprep.subr.mxu1 %v854_v0  ;;  %v365_v21 = vld [vmem:[#allocation5 + $0x60] sm:$0xff]  ;;  %v364_v22 = vld [vmem:[#allocation5 + $0x58] sm:$0xff]  ;;  %v363_v23 = vld [vmem:[#allocation5 + $0x50] sm:$0xff]  ;;  %s780_s30 = scalar_lea.vmem %s462_s16, 128  ;;  %s784_s22 = sshll.u32 %s856_s6, 4  ;;  %s785_s22 = int_to_ptr.vmem [resolvable:$false] %s784_s22 }
  0x3b   : > { %598 = vmatprep.subr.mxu0 %v854_v0  ;;  %630 = vmatpush3.msra.mxu1 %v367_v19  ;;  %v362_v24 = vld [vmem:[#allocation5 + $0x48] sm:$0xff]  ;;  %v361_v25 = vld [vmem:[#allocation5 + $0x40] sm:$0xff]  ;;  %v360_v26 = vld [vmem:[#allocation5 + $0x38] sm:$0xff]  ;;  %p781_p10 = scmp.ne.s32.totalorder %s462_s16, %s780_s30  ;;  %s786_s7 = scalar_lea.vmem %s785_s22, 256 }
  0x3c   : > { %599 = vmatpush3.msra.mxu0 %v263_v4  ;;  %631 = vmatprep.subr.mxu1 %v854_v0  ;;  %v359_v27 = vld [vmem:[#allocation5 + $0x30] sm:$0xff]  ;;  %v358_v28 = vld [vmem:[#allocation5 + $0x28] sm:$0xff]  ;;  %v357_v29 = vld [vmem:[#allocation5 + $0x20] sm:$0xff]  ;;  %p787_p11 = scmp.lt.s32.totalorder %s462_s16, %s785_s22  ;;  %p788_p0 = scmp.lt.s32.totalorder %s786_s7, %s780_s30 }
  0x3d   : > { %600 = vmatprep.subr.mxu0 %v854_v0  ;;  %632 = vmatpush3.msra.mxu1 %v366_v20  ;;  %v356_v30 = vld [vmem:[#allocation5 + $0x18] sm:$0xff]  ;;  %v355_v31 = vld [vmem:[#allocation5 + $0x10] sm:$0xff]  ;;  %v354_v32 = vld [vmem:[#allocation5 + $0x8] sm:$0xff]  ;;  %p782_p12 = pnand %p781_p10, %p925_p5 }
  0x3e   : > { %601 = vmatpush3.msra.mxu0 %v262_v5  ;;  %633 = vmatprep.subr.mxu1 %v854_v0  ;;  %v353_v33 = vld [vmem:[#allocation5] sm:$0xff]  ;;  %p789_p1 = por %p788_p0, %p787_p11 }
  0x3f   : > { %602 = vmatprep.subr.mxu0 %v854_v0  ;;  %634 = vmatpush3.msra.mxu1 %v365_v21  ;;  %v552_v34 = vld [vmem:[%s1063_s2] ss:$0 sm:$0xff]  ;;  %p783_p8 = pneg %p782_p12 }
  0x40   : > { %603 = vmatpush3.msra.mxu0 %v261_v6  ;;  %635 = vmatprep.subr.mxu1 %v854_v0  ;;  %v553_v47 = vld [vmem:[%s1065_s4] ss:$0 sm:$0xff] }
  0x41   : > { %604 = vmatprep.subr.mxu0 %v854_v0  ;;  %636 = vmatpush3.msra.mxu1 %v364_v22  ;;  %p790_p3 = pnand %p789_p1, %p783_p8 }
  0x42   : > { %605 = vmatpush3.msra.mxu0 %v260_v7  ;;  %637 = vmatprep.subr.mxu1 %v854_v0 }
  0x43   : > { %606 = vmatprep.subr.mxu0 %v854_v0  ;;  %638 = vmatpush3.msra.mxu1 %v363_v23 }
  0x44   : > { %607 = vmatpush3.msra.mxu0 %v259_v8  ;;  %639 = vmatprep.subr.mxu1 %v854_v0 }
  0x45   : > { %608 = vmatprep.subr.mxu0 %v854_v0  ;;  %640 = vmatpush3.msra.mxu1 %v362_v24 }
  0x46   : > { %609 = vmatpush3.msra.mxu0 %v258_v9  ;;  %641 = vmatprep.subr.mxu1 %v854_v0 }
  0x47   : > { %610 = vmatprep.subr.mxu0 %v854_v0  ;;  %642 = vmatpush3.msra.mxu1 %v361_v25 }
  0x48   : > { %611 = vmatpush3.msra.mxu0 %v257_v10  ;;  %643 = vmatprep.subr.mxu1 %v854_v0 }
  0x49   : > { %612 = vmatprep.subr.mxu0 %v854_v0  ;;  %644 = vmatpush3.msra.mxu1 %v360_v26 }
  0x4a   : > { %613 = vmatpush3.msra.mxu0 %v256_v11  ;;  %645 = vmatprep.subr.mxu1 %v854_v0 }
  0x4b   : > { %614 = vmatprep.subr.mxu0 %v854_v0  ;;  %646 = vmatpush3.msra.mxu1 %v359_v27 }
  0x4c   : > { %615 = vmatpush3.msra.mxu0 %v255_v12  ;;  %647 = vmatprep.subr.mxu1 %v854_v0 }
  0x4d   : > { %616 = vmatprep.subr.mxu0 %v854_v0  ;;  %648 = vmatpush3.msra.mxu1 %v358_v28 }
  0x4e   : > { %617 = vmatpush3.msra.mxu0 %v254_v13  ;;  %649 = vmatprep.subr.mxu1 %v854_v0 }
  0x4f   : > { %618 = vmatprep.subr.mxu0 %v854_v0  ;;  %650 = vmatpush3.msra.mxu1 %v357_v29 }
  0x50   : > { %619 = vmatpush3.msra.mxu0 %v253_v14  ;;  %651 = vmatprep.subr.mxu1 %v854_v0 }
  0x51   : > { %620 = vmatprep.subr.mxu0 %v854_v0  ;;  %652 = vmatpush3.msra.mxu1 %v356_v30 }
  0x52   : > { %621 = vmatpush3.msra.mxu0 %v252_v15  ;;  %653 = vmatprep.subr.mxu1 %v854_v0 }
  0x53   : > { %622 = vmatprep.subr.mxu0 %v854_v0  ;;  %654 = vmatpush3.msra.mxu1 %v355_v31 }
  0x54   : > { %623 = vmatpush3.msra.mxu0 %v251_v16  ;;  %655 = vmatprep.subr.mxu1 %v854_v0 }
  0x55   : > { %625 = vmatmul.mubr.f32.vlgmr.msra.gmra.mxu0 %v250_v17  ;;  %656 = vmatpush3.msra.mxu1 %v354_v32 }
  0x56   : > { %657 = vmatprep.subr.mxu1 %v854_v0 }
  0x57   : > { %658 = vmatpush3.msra.mxu1 %v353_v33 }
 0x115   : > { %v340_v35 = vpop.f32.mrf.mxu0 }
 0x116   : > { %v341_v36 = vadd.f32 %v552_v34, %v340_v35 }
 0x117   : > { %v626_v37 = vpop.f32.mrf.mxu0 }
 0x118   : > { %v344_v38 = vmul.f32 %v341_v36, %v341_v36 }
 0x11a   : > { %v345_v39 = vmul.f32 %v344_v38, %v341_v36 }
 0x11c   : > { %v346_v40 = vmul.f32 0.044715, %v345_v39 }
 0x11e   : > { %v347_v41 = vadd.f32 %v346_v40, %v341_v36 }
 0x120   : > { %v348_v42 = vmul.f32 0.7978846, %v347_v41 }
 0x122   : > { %726 = vtanh.f32 %v348_v42 }
 0x12f   : > { %v727_v43 = vpop.eup %726 }
 0x130   : > { %v350_v44 = vadd.f32 1.0, %v727_v43 }
 0x132   : > { %v351_v45 = vmul.f32 0.5, %v350_v44 }
 0x134   : > { %v352_v46 = vmul.f32 %v351_v45, %v341_v36 }
 0x136   : > { %660 = vmatmul.mubr.f32.vlgmr.msra.gmra.mxu1 %v352_v46 }
 0x1f6   : > { %v442_v48 = vpop.f32.mrf.mxu1 }
 0x1f7   : > { %v443_v49 = vadd.f32 %v553_v47, %v442_v48 }
 0x1f8   : > { %v661_v50 = vpop.f32.mrf.mxu1 }
 0x1f9   : > { %446 = vst [vmem:[%s245_s15] sm:$0xff] %v443_v49 }
 0x1fa   : > { %793 = shalt.err (!%p790_p3)
}
 0x1fb   : > { %s794_s8 = scalar_lea.hbm %s1026_s25, 128  ;;  %s798_s11 = scalar_lea.hbm %s1066_s5, 256 }
 0x1fc   : > { %p795_p2 = scmp.ne.s32.totalorder %s1026_s25, %s794_s8  ;;  %p799_p7 = scmp.lt.s32.totalorder %s1026_s25, %s1066_s5 }
 0x1fd   : > { %p800_p6 = scmp.lt.s32.totalorder %s798_s11, %s794_s8 }
 0x1fe   : > { %p796_p4 = pnand %p795_p2, %p925_p5 }
 0x1ff   : > { %p801_p9 = por %p800_p6, %p799_p7 }
 0x200   : > { %p797_p13 = pneg %p796_p4 }
 0x202   : > { %p802_p10 = pnand %p801_p9, %p797_p13 }
 0x204   : > { %805 = shalt.err (!%p802_p10)
}
 0x205   : > { %670 = dma.vmem_to_hbm [thread:$0]  (%p925_p5), %s462_s16, 128, %s1026_s25, %s448_s26  }
 0x206 PF: > { %p687_p12 = scmp.ge.s32.totalorder %s848_s21, 2  ;;  %s473_s14 = sand.u32 1, %s836_s18  }
 0x207   : > { %p1076_p8 = scmp.ne.s32.totalorder %s1069_s29, 0  ;;  %s474_s15 = scalar_lea.sflag [#allocation4], %s473_s14 }
 0x209   : > { %p680_p11 = pnand %p687_p12, %p1076_p8 }
 0x20b   : > { %p681_p0 = pneg %p680_p11 }
 0x20d   : > { %831 = dma.done.wait (%p681_p0), %s474_s15, 128  }
 0x20e   : > { %833 = vsyncadd (%p681_p0), %s474_s15, 4294967168  ;;  %p17_p1 = scmp.ge.s32.totalorder %s912_s24, 4   ;;  %s1077_s18 = smov %s840_s19 }
 0x20f   : > { %s1078_s19 = smov %s844_s20  ;;  %s1079_s20 = smov %s923_s27 }
 0x210   : > { %s1080_s21 = smov %s912_s24  ;;  %19 = sbr.rel (!%p17_p1) target bundleno = 5 (0x5), region = 84 }
 0x215   :  { %479 = vsyncpa [#allocation3], 1 }
 0x216   :  { %481 = vsyncpa [#allocation3 + $0x1], 1 }
 0x217   :  { %482 = vsyncpa [#allocation6], 1 }
 0x218   :  { %483 = vsyncpa [#allocation4], 1 }
 0x219   :  { %485 = vsyncpa [#allocation4 + $0x1], 1 }

</bundles_post_ra>
